<compile_context>
chip_gen: v6e
topology: v6e:2x2x1
jax: 0.10.0
libtpu: 0.0.40
codegen_flags: <defaults>
</compile_context>

<pallas_src>
import functools

import jax
import jax.numpy as jnp
from jax.experimental import pallas as pl
from jax.experimental.pallas import tpu as pltpu

HEATMAP_CH = 21
LANE = 128


def _round_up(x, m):
    return (x + m - 1) // m * m


@functools.lru_cache(maxsize=None)
def _tn_max():
    # v5e's MXU is 4x128^2: a 256-wide N block buys no fill, only doubles the
    # resident weight tile.  v6e/v7x MXUs are 256 wide.
    try:
        kind = jax.devices()[0].device_kind.lower()
    except Exception:
        return 256
    return 256 if ("v6" in kind or "v7" in kind) else 128


@functools.lru_cache(maxsize=None)
def _vmem_limit_bytes():
    # Budget against v7x (64 MiB physical / 32 MiB default scoped).
    lim = 32 * 1024 * 1024
    try:
        cap = int(pltpu.get_tpu_info().vmem_capacity_bytes)
        lim = min(lim, cap // 2)
    except Exception:
        pass
    return lim


# ----------------------- fused conv-matmul Pallas kernel ---------------------

def _mm_bn_kernel(a_ref, b_ref, s_ref, c_ref, o_ref, *, relu):
    # bf16 operands on the MXU, f32 accumulation; BN scale/bias + ReLU fused;
    # bf16 store (the next conv re-reads activations in bf16 anyway).
    y = jnp.dot(a_ref[...], b_ref[...], preferred_element_type=jnp.float32)
    y = y * s_ref[...] + c_ref[...]
    if relu:
        y = jnp.maximum(y, 0.0)
    o_ref[...] = y.astype(o_ref.dtype)


def _mm_bn_res_kernel(a_ref, b_ref, s_ref, c_ref, r_ref, o_ref, *, relu):
    y = jnp.dot(a_ref[...], b_ref[...], preferred_element_type=jnp.float32)
    y = y * s_ref[...] + c_ref[...] + r_ref[...].astype(jnp.float32)
    if relu:
        y = jnp.maximum(y, 0.0)
    o_ref[...] = y.astype(o_ref.dtype)


def _tiles_mn(M, N):
    if M >= 128:
        tm = 128
    else:
        tm = max(16, _round_up(M, 16))      # bf16 packs 16 rows per sublane grp
    Mp = _round_up(M, tm)

    if N % 256 == 0 and N // 256 >= 2 and _tn_max() >= 256:
        tn = 256                            # fills the 2x256^2 MXU (v6e/v7x)
    elif N % 128 == 0:
        tn = 128
    else:
        tn = N                              # full-extent lane block (fallback)

    # Never launch a single-step grid: with one step there is no double
    # buffering (weight DMA fully exposed) and only one v7x TC gets work.
    if (Mp // tm) * (N // tn) == 1:
        if tn % 256 == 0:
            tn //= 2
        else:
            tm2 = tm // 2
            if tm2 >= 8 and _round_up(M, tm2) // tm2 >= 2:
                tm = tm2
                Mp = _round_up(M, tm)
    return tm, Mp, tn


def matmul_bn_act(a, wmat, scale, bias, residual=None, relu=True,
                  out_dtype=jnp.bfloat16):
    """(M,Kp) x (Kp,N) matmul with fused folded-BN (+residual) (+ReLU) epilogue.

    `a` is bf16 with K already padded to Kp (im2col folds the pad in); `wmat`
    is pre-transposed / pre-padded / bf16.  Accumulation & epilogue are f32,
    the stored activation is bf16.
    """
    M, Kp = a.shape
    Kw, N = wmat.shape
    assert Kp == Kw, (Kp, Kw)
    tm, Mp, tn = _tiles_mn(M, N)
    if Mp != M:
        a = jnp.pad(a, ((0, Mp - M), (0, 0)))

    args = [a, wmat, scale, bias]
    # Grid = (N tiles, M tiles): M innermost so the (Kp, tn) weight block stays
    # VMEM-resident across the M sweep; only the A tile streams.
    in_specs = [pl.BlockSpec((tm, Kp), lambda j, i: (i, 0)),
                pl.BlockSpec((Kp, tn), lambda j, i: (0, j)),
                pl.BlockSpec((1, tn), lambda j, i: (0, j)),
                pl.BlockSpec((1, tn), lambda j, i: (0, j))]
    if residual is not None:
        r = residual
        if r.dtype != jnp.bfloat16:
            r = r.astype(jnp.bfloat16)
        if Mp != M:
            r = jnp.pad(r, ((0, Mp - M), (0, 0)))
        args.append(r)
        in_specs.append(pl.BlockSpec((tm, tn), lambda j, i: (i, j)))
        kernel = functools.partial(_mm_bn_res_kernel, relu=relu)
    else:
        kernel = functools.partial(_mm_bn_kernel, relu=relu)

    out = pl.pallas_call(
        kernel,
        out_shape=jax.ShapeDtypeStruct((Mp, N), out_dtype),
        grid_spec=pltpu.PrefetchScalarGridSpec(
            num_scalar_prefetch=0,
            grid=(N // tn, Mp // tm),
            in_specs=in_specs,
            out_specs=pl.BlockSpec((tm, tn), lambda j, i: (i, j))),
        compiler_params=pltpu.CompilerParams(
            dimension_semantics=("parallel", "parallel"),
            vmem_limit_bytes=_vmem_limit_bytes()),
    )(*args)
    return out[:M] if Mp != M else out


# ------------------------------ max-pool kernel ------------------------------

def _max9_kernel(*refs):
    *in_refs, o_ref = refs
    m = in_refs[0][...]
    for r in in_refs[1:]:
        m = jnp.maximum(m, r[...])
    o_ref[...] = m


def maxpool3x3_s2(x):
    """3x3 / stride 2 / pad 1 max pool, NHWC.  The 9 shifted views are 9
    separate inputs of one gridded VPU kernel; C is lane-dense (128)."""
    N, H, W, C = x.shape
    Ho = (H + 2 - 3) // 2 + 1
    Wo = (W + 2 - 3) // 2 + 1
    xp = jnp.pad(x, ((0, 0), (1, 1), (1, 1), (0, 0)),
                 constant_values=-jnp.inf)
    M = N * Ho * Wo
    slices = []
    for i in range(3):
        for j in range(3):
            slices.append(
                xp[:, i:i + 2 * (Ho - 1) + 1:2,
                   j:j + 2 * (Wo - 1) + 1:2, :].reshape(M, C))

    if M >= 1024:
        tr = 512
    else:
        tr = max(8, _round_up(M // 2, 8))    # >= 2 grid steps when possible
    Mp = _round_up(M, tr)
    if Mp != M:
        slices = [jnp.pad(s, ((0, Mp - M), (0, 0))) for s in slices]

    out = pl.pallas_call(
        _max9_kernel,
        out_shape=jax.ShapeDtypeStruct((Mp, C), x.dtype),
        grid_spec=pltpu.PrefetchScalarGridSpec(
            num_scalar_prefetch=0,
            grid=(Mp // tr,),
            in_specs=[pl.BlockSpec((tr, C), lambda i: (i, 0))] * 9,
            out_specs=pl.BlockSpec((tr, C), lambda i: (i, 0))),
        compiler_params=pltpu.CompilerParams(
            dimension_semantics=("parallel",),
            vmem_limit_bytes=_vmem_limit_bytes()),
    )(*slices)
    return out[:M].reshape(N, Ho, Wo, C)


# --------------------------- conv = im2col + matmul --------------------------

def _im2col(x, cin, kh, kw, stride, padding, Kp):
    """im2col with the lane-padding channel slice and the K->Kp zero pad folded
    into the single concatenate (the patch matrix is written to HBM once)."""
    if x.shape[-1] != cin:
        x = x[..., :cin]                     # drop zero lane-padding channels
    x = x.astype(jnp.bfloat16)
    N, H, W, C = x.shape
    Ho = (H + 2 * padding - kh) // stride + 1
    Wo = (W + 2 * padding - kw) // stride + 1
    xp = jnp.pad(x, ((0, 0), (padding, padding), (padding, padding), (0, 0)))
    cols = []
    for i in range(kh):
        for j in range(kw):
            cols.append(xp[:, i:i + stride * (Ho - 1) + 1:stride,
                           j:j + stride * (Wo - 1) + 1:stride, :])
    K = kh * kw * cin
    if Kp > K:
        cols.append(jnp.zeros((N, Ho, Wo, Kp - K), jnp.bfloat16))
    # TODO(synk): replace im2col with a halo-tile tap-accumulating conv kernel
    # to remove the kh*kw read amplification once img_hw scales toward 224.
    patches = jnp.concatenate(cols, axis=-1)          # (N, Ho, Wo, Kp)
    return patches.reshape(N * Ho * Wo, Kp), (N, Ho, Wo)


def conv_bn(x, p, residual=None, relu=True):
    """NHWC conv with folded BN (+residual) (+ReLU), all fused in one kernel."""
    patches, dims = _im2col(x, p['cin'], p['kh'], p['kw'], p['stride'],
                            p['pad'], p['wmat'].shape[0])
    out = matmul_bn_act(patches, p['wmat'], p['scale'], p['bias'],
                        residual=residual, relu=relu)
    return out, dims


# -------------------------------- parameters ---------------------------------

def _conv_w(key, cout, cin, kh, kw):
    std = (2.0 / (cin * kh * kw)) ** 0.5
    return std * jax.random.normal(key, (cout, cin, kh, kw), jnp.float32)


def _fold_bn(key, c):
    k1, k2, k3, k4 = jax.random.split(key, 4)
    gamma = 1.0 + 0.05 * jax.random.normal(k1, (c,), jnp.float32)
    beta = 0.05 * jax.random.normal(k2, (c,), jnp.float32)
    mean = 0.05 * jax.random.normal(k3, (c,), jnp.float32)
    var = 1.0 + 0.05 * jax.random.uniform(k4, (c,), jnp.float32)
    scale = gamma / jnp.sqrt(var + 1e-5)
    bias = beta - mean * scale
    return scale, bias


def _conv_bn_params(kit, cout, cin, kh, kw, stride, pad):
    w = _conv_w(next(kit), cout, cin, kh, kw)
    K = kh * kw * cin
    Kp = _round_up(K, LANE)
    # Lane-pad output channels to a multiple of 128 with zero weights / zero
    # bias so padded lanes compute exactly 0 (relu(0)=0); keeps the epilogue
    # stores, the maxpool and the residual adds lane-dense full-width.
    cout_p = _round_up(cout, LANE)
    wmat = jnp.transpose(w, (2, 3, 1, 0)).reshape(K, cout)
    wmat = jnp.pad(wmat, ((0, Kp - K), (0, cout_p - cout))).astype(jnp.bfloat16)
    scale, bias = _fold_bn(next(kit), cout)
    scale = jnp.pad(scale, (0, cout_p - cout))
    bias = jnp.pad(bias, (0, cout_p - cout))
    return {'wmat': wmat,
            'scale': scale.reshape(1, cout_p).astype(jnp.float32),
            'bias': bias.reshape(1, cout_p).astype(jnp.float32),
            'kh': kh, 'kw': kw, 'stride': stride, 'pad': pad,
            'cin': cin, 'cout': cout, 'cout_p': cout_p}


def _init_block(kit, cin, cout, stride):
    p = {'conv1': _conv_bn_params(kit, cout, cin, 3, 3, stride, 1),
         'conv2': _conv_bn_params(kit, cout, cout, 3, 3, 1, 1)}
    if stride != 1 or cin != cout:
        p['down'] = _conv_bn_params(kit, cout, cin, 1, 1, stride, 0)
    return p


def init_params(key, lstm_hidden, lstm_layers, bidirectional):
    kit = iter(jax.random.split(key, 256))
    params = {'stem': _conv_bn_params(kit, 64, 3, 7, 7, 2, 3)}
    cfg = [('layer1', 64 + HEATMAP_CH, 64, 1), ('layer2', 64, 128, 2),
           ('layer3', 128, 256, 2), ('layer4', 256, 512, 2)]
    for name, cin, cout, stride in cfg:
        params[name] = [_init_block(kit, cin, cout, stride),
                        _init_block(kit, cout, cout, 1)]

    ndir = 2 if bidirectional else 1
    kc = 1.0 / (lstm_hidden ** 0.5)
    lstm = []
    for layer in range(lstm_layers):
        in_size = 512 if layer == 0 else ndir * lstm_hidden
        # pre-transposed batched projection weights + pre-summed b_ih + b_hh
        w_ih_t = jax.random.uniform(next(kit), (in_size, ndir * 4 * lstm_hidden),
                                    jnp.float32, -kc, kc)
        b = (jax.random.uniform(next(kit), (ndir * 4 * lstm_hidden,),
                                jnp.float32, -kc, kc)
             + jax.random.uniform(next(kit), (ndir * 4 * lstm_hidden,),
                                  jnp.float32, -kc, kc))
        w_hh_t = [jax.random.uniform(next(kit), (lstm_hidden, 4 * lstm_hidden),
                                     jnp.float32, -kc, kc) for _ in range(ndir)]
        lstm.append({'w_ih_t': w_ih_t, 'b': b, 'w_hh_t': w_hh_t})
    params['lstm'] = lstm

    lin_in = ndir * lstm_hidden
    kl = 1.0 / (lin_in ** 0.5)
    params['lin_w_t'] = jax.random.uniform(next(kit), (lin_in, 9),
                                           jnp.float32, -kl, kl)
    params['lin_b'] = jax.random.uniform(next(kit), (9,), jnp.float32, -kl, kl)
    return params


# ------------------------------- ResNet pieces -------------------------------

def run_block(x, p):
    cout_p = p['conv1']['cout_p']
    y2d, (N, Ho, Wo) = conv_bn(x, p['conv1'], relu=True)
    y = y2d.reshape(N, Ho, Wo, cout_p)
    if 'down' in p:
        idn2d, _ = conv_bn(x, p['down'], relu=False)
    else:
        idn2d = x.reshape(N * Ho * Wo, cout_p)   # identity path (same channels)
    out2d, _ = conv_bn(y, p['conv2'], residual=idn2d, relu=True)
    return out2d.reshape(N, Ho, Wo, cout_p)


def run_layer(x, blocks):
    for p in blocks:
        x = run_block(x, p)
    return x


# ----------------------------------- LSTM ------------------------------------

def lstm_forward(x, lstm_params, hidden, bidirectional):
    B, T, _ = x.shape
    ndir = 2 if bidirectional else 1
    inp = x
    for layer in lstm_params:
        # One batched input projection for both directions; M = B*T is far
        # below one MXU tile, so plain jnp.dot beats a padded Pallas launch.
        proj = inp.reshape(B * T, -1) @ layer['w_ih_t'] + layer['b']
        proj = proj.reshape(B, T, ndir, 4 * hidden)

        outs = []
        for d in range(ndir):
            g = proj[:, :, d, :]
            if d == 1:
                g = g[:, ::-1, :]

            def cell(carry, g_t, w_hh_t=layer['w_hh_t'][d]):
                h, c = carry
                # TODO(synk): recurrent h @ W_hh kept in plain JAX (shapes far
                # below one MXU tile; no benefit from a Pallas kernel).
                gates = g_t + h @ w_hh_t
                i, f, gg, o = jnp.split(gates, 4, axis=-1)
                i = jax.nn.sigmoid(i)
                f = jax.nn.sigmoid(f)
                gg = jnp.tanh(gg)
                o = jax.nn.sigmoid(o)
                c = f * c + i * gg
                h = o * jnp.tanh(c)
                return (h, c), h

            h0 = jnp.zeros((B, hidden), jnp.float32)
            c0 = jnp.zeros((B, hidden), jnp.float32)
            _, hs = jax.lax.scan(cell, (h0, c0), jnp.swapaxes(g, 0, 1))
            hs = jnp.swapaxes(hs, 0, 1)                 # (B, T, H)
            if d == 1:
                hs = hs[:, ::-1, :]
            outs.append(hs)
        inp = jnp.concatenate(outs, axis=-1) if ndir > 1 else outs[0]
    return inp


# -------------------------------- full forward -------------------------------

def plan1_concat_forward(params, x_flat, *, img_hw, heatmap_size, lstm_hidden,
                         bidirectional):
    # Mirrors the PyTorch forward's flat-input parsing (generalized sizes).
    img_elems = 3 * img_hw * img_hw
    hm_elems = HEATMAP_CH * heatmap_size * heatmap_size
    k = x_flat.shape[0] // (img_elems + hm_elems)
    x = x_flat[:img_elems * k].reshape(1, k, 3, img_hw, img_hw)
    heatmaps = x_flat[img_elems * k:].reshape(1, k, HEATMAP_CH,
                                              heatmap_size, heatmap_size)
    B, T = 1, k
    BT = B * T

    c_in = jnp.transpose(x.reshape(BT, 3, img_hw, img_hw), (0, 2, 3, 1))  # NHWC
    hm = jnp.transpose(heatmaps.reshape(BT, HEATMAP_CH,
                                        heatmap_size, heatmap_size),
                       (0, 2, 3, 1))                                      # NHWC

    # cnn1 = conv7x7/s2 + BN + ReLU (fused kernel) + maxpool3x3/s2
    y2d, (N, Ho, Wo) = conv_bn(c_in, params['stem'], relu=True)
    out1 = maxpool3x3_s2(y2d.reshape(N, Ho, Wo, params['stem']['cout_p']))
    assert out1.shape[1] == heatmap_size and out1.shape[2] == heatmap_size
    out1 = out1[..., :params['stem']['cout']]      # drop zero lane padding

    # torch.cat((c_out, heatmaps), dim=1)  ->  channel concat in NHWC (bf16)
    feat = jnp.concatenate([out1, hm.astype(out1.dtype)], axis=-1)

    # cnn2 = layer1..layer4 + adaptive avg-pool to 1x1
    feat = run_layer(feat, params['layer1'])
    feat = run_layer(feat, params['layer2'])
    feat = run_layer(feat, params['layer3'])
    feat = run_layer(feat, params['layer4'])
    N5, H5, W5, C5 = feat.shape
    c_out = feat.reshape(N5, H5 * W5, C5).astype(jnp.float32).mean(axis=1)
    # nn.Dropout(0.5): identity in eval mode.

    r_in = c_out.reshape(B, T, -1)
    r_out = lstm_forward(r_in, params['lstm'], lstm_hidden, bidirectional)
    flat = r_out.reshape(BT, -1)

    # Final linear (M=BT, N=9) + softmax: kept in plain JAX per perf review.
    logits = flat @ params['lin_w_t'] + params['lin_b']
    return jax.nn.softmax(logits, axis=1)                 # (B*T, 9)


# ------------------------------------ main ------------------------------------

if __name__ == "__main__":
    key = jax.random.PRNGKey(0)
    kp, kx = jax.random.split(key, 2)

    img_hw = 32
    heatmap_size = img_hw // 4            # stem downsamples by 4 (224 -> 56)
    T = 4                                 # timesteps ("k" in the original)
    lstm_hidden, lstm_layers, bidirectional = 32, 1, True

    params = init_params(kp, lstm_hidden, lstm_layers, bidirectional)

    flat_len = T * (3 * img_hw * img_hw
                    + HEATMAP_CH * heatmap_size * heatmap_size)
    x_flat = 0.5 * jax.random.normal(kx, (flat_len,), jnp.float32)

    out = plan1_concat_forward(params, x_flat,
                               img_hw=img_hw, heatmap_size=heatmap_size,
                               lstm_hidden=lstm_hidden,
                               bidirectional=bidirectional)
    out = jax.block_until_ready(out)
    assert out.shape == (T, 9), out.shape
    assert bool(jnp.all(jnp.isfinite(out)))
    assert bool(jnp.allclose(jnp.sum(out, axis=1), 1.0, atol=1e-4))
    print("KERNEL_OK")
</pallas_src>

<mosaic_0001>
module attributes {stable_mosaic.version = 11 : i64} {
  func.func @_mm_bn_kernel(%arg0: i32, %arg1: i32, %arg2: memref<128x256xbf16, #tpu.memory_space<vmem>>, %arg3: memref<256x128xbf16, #tpu.memory_space<vmem>>, %arg4: memref<1x128xf32, #tpu.memory_space<vmem>>, %arg5: memref<1x128xf32, #tpu.memory_space<vmem>>, %arg6: memref<128x128xbf16, #tpu.memory_space<vmem>>) attributes {dimension_semantics = [#tpu.dimension_semantics<parallel>, #tpu.dimension_semantics<parallel>], iteration_bounds = array<i64: 1, 8>, scalar_prefetch = 0 : i64, scratch_operands = 0 : i64, tpu.core_type = #tpu.core_type<tc>, window_params = [{transform_indices = @transform_0, window_bounds = array<i64: 128, 256>}, {transform_indices = @transform_1, window_bounds = array<i64: 256, 128>}, {transform_indices = @transform_2, window_bounds = array<i64: 1, 128>}, {transform_indices = @transform_3, window_bounds = array<i64: 1, 128>}, {transform_indices = @transform_4, window_bounds = array<i64: 128, 128>}]} {
    %c0 = arith.constant 0 : index
    %c0_0 = arith.constant 0 : index
    %0 = vector.load %arg2[%c0, %c0_0] : memref<128x256xbf16, #tpu.memory_space<vmem>>, vector<128x256xbf16>
    %c0_1 = arith.constant 0 : index
    %c0_2 = arith.constant 0 : index
    %1 = vector.load %arg3[%c0_1, %c0_2] : memref<256x128xbf16, #tpu.memory_space<vmem>>, vector<256x128xbf16>
    %cst = arith.constant dense<0.000000e+00> : vector<128x128xf32>
    %2 = tpu.matmul %0, %1, %cst {dimension_numbers = #tpu.dot_dimension_numbers<[1], [0], [0], [1], [0, 0, 1, 1], [], []>} : vector<128x256xbf16>, vector<256x128xbf16>, vector<128x128xf32> -> vector<128x128xf32>
    %c0_3 = arith.constant 0 : index
    %c0_4 = arith.constant 0 : index
    %3 = vector.load %arg4[%c0_3, %c0_4] : memref<1x128xf32, #tpu.memory_space<vmem>>, vector<1x128xf32>
    %4 = vector.broadcast %3 : vector<1x128xf32> to vector<128x128xf32>
    %5 = arith.mulf %2, %4 : vector<128x128xf32>
    %c0_5 = arith.constant 0 : index
    %c0_6 = arith.constant 0 : index
    %6 = vector.load %arg5[%c0_5, %c0_6] : memref<1x128xf32, #tpu.memory_space<vmem>>, vector<1x128xf32>
    %7 = vector.broadcast %6 : vector<1x128xf32> to vector<128x128xf32>
    %8 = arith.addf %5, %7 : vector<128x128xf32>
    %cst_7 = arith.constant 0.000000e+00 : f32
    %9 = vector.broadcast %cst_7 : f32 to vector<128x128xf32>
    %10 = arith.maximumf %8, %9 : vector<128x128xf32>
    %11 = arith.truncf %10 : vector<128x128xf32> to vector<128x128xbf16>
    %c0_8 = arith.constant 0 : index
    %c0_9 = arith.constant 0 : index
    %12 = vector.load %arg6[%c0_8, %c0_9] : memref<128x128xbf16, #tpu.memory_space<vmem>>, vector<128x128xbf16>
    tpu.vector_store %arg6[%c0_8, %c0_9], %11 {strides = array<i32>} : memref<128x128xbf16, #tpu.memory_space<vmem>>, vector<128x128xbf16>,
    return
  }
  func.func @transform_0(%arg0: i32, %arg1: i32) -> (i32, i32) {
    %c0_i32 = arith.constant 0 : i32
    %c0_i32_0 = arith.constant 0 : i32
    return %arg1, %c0_i32 : i32, i32
  }
  func.func @transform_1(%arg0: i32, %arg1: i32) -> (i32, i32) {
    %c0_i32 = arith.constant 0 : i32
    %c0_i32_0 = arith.constant 0 : i32
    return %c0_i32, %arg0 : i32, i32
  }
  func.func @transform_2(%arg0: i32, %arg1: i32) -> (i32, i32) {
    %c0_i32 = arith.constant 0 : i32
    %c0_i32_0 = arith.constant 0 : i32
    return %c0_i32, %arg0 : i32, i32
  }
  func.func @transform_3(%arg0: i32, %arg1: i32) -> (i32, i32) {
    %c0_i32 = arith.constant 0 : i32
    %c0_i32_0 = arith.constant 0 : i32
    return %c0_i32, %arg0 : i32, i32
  }
  func.func @transform_4(%arg0: i32, %arg1: i32) -> (i32, i32) {
    %c0_i32 = arith.constant 0 : i32
    return %arg1, %arg0 : i32, i32
  }
}

</mosaic_0001>

<bundles_post_ra>
// kernel: tpu_custom_call.1
= control target key start
LH: loop header
LB: loop body
LE: loop exit
PB: predicated region body
PF: predicated region fallthrough
CT: control target
= control target key end

     0   :  { %s1641_s0 = inlined_call_operand.hbm [shape: bf16[1024,256], index: 0, kind: input, shape index: {}]   ;;  %s1642_s1 = inlined_call_operand.hbm [shape: bf16[256,128], index: 1, kind: input, shape index: {}]   ;;  %s1643_s2 = inlined_call_operand.vmem [shape: f32[1,128], index: 2, kind: input, shape index: {}]   ;;  %s1644_s3 = inlined_call_operand.vmem [shape: f32[1,128], index: 3, kind: input, shape index: {}]   ;;  %s1645_s4 = inlined_call_operand.hbm [shape: bf16[1024,128], index: 4, kind: output, shape index: {}]  }
   0x1   :  { %1647 = sst [smem:[#allocation11_spill]] %s1642_s1 }
   0x2   :  { %9 = vsyncpa [#allocation3], 0 }
   0x3   :  { %11 = vsyncpa [#allocation3 + $0x1], 0 }
   0x4   :  { %12 = vsyncpa [#allocation6], 0 }
   0x5   :  { %13 = vsyncpa [#allocation4], 0 }
   0x6   :  { %15 = vsyncpa [#allocation4 + $0x1], 0  ;;  %s1390_s15 = smov 0   ;;  %s1392_s16 = smov 0  }
   0x7   :  { %s1394_s17 = smov 0   ;;  %s1396_s18 = smov 0  }
   0x8   :  { %s1398_s19 = smov 0   ;;  %s1400_s20 = smov 0  }
   0x9 LB: > { %s881_s21 = sadd.s32 4294967295, %s1354_s20   ;;  %s882_s22 = sadd.s32 4294967294, %s1354_s20   ;;  %s1354_s20 = sphi %s1400_s20, %s21_s20   ;;  %s1350_s19 = sphi %s1398_s19, %s1664_s19   ;;  %s1346_s18 = sphi %s1396_s18, %s1663_s18   ;;  %s1342_s17 = sphi %s1394_s17, %s1662_s17   ;;  %s1338_s16 = sphi %s1392_s16, %s1661_s16   ;;  %s1334_s15 = sphi %s1390_s15, %s1660_s15  }
   0xa   : > { %p53_p0 = scmp.ne.s32.totalorder %s1338_s16, %s1334_s15  ;;  %p1424_p1 = scmp.eq.s32.totalorder %s881_s21, 0 }
   0xb   : > { %p1428_p2 = scmp.eq.s32.totalorder %s881_s21, 7  ;;  %p163_p3 = scmp.eq.s32.totalorder %s882_s22, 7 }
   0xc   : > { %p1434_p4 = por %p1424_p1, %p53_p0  ;;  %p883_p5 = scmp.ge.s32.totalorder %s1354_s20, 1 }
   0xd   : > { %p1439_p6 = por %p163_p3, %p53_p0  ;;  %p170_p7 = scmp.lt.s32.totalorder %s1354_s20, 9 }
   0xe   : > { %s1356_s28 = smov [#allocation5]   ;;  %s30_s5 = sadd.s32 1, %s1350_s19 }
   0xf   : > { %s1651_s26 = scalar_select %p1439_p6, 1, 0 }
  0x10   : > { %p1444_p8 = pnand %p883_p5, %p170_p7  ;;  %s184_s29 = sshll.u32 %s1356_s28, 4  ;;  %s185_s29 = int_to_ptr.vmem [resolvable:$true] %s184_s29 }
  0x11   : > { %s1227_s6 = scalar_lea.vmem %s185_s29, 2048  ;;  %p1235_p3 = scmp.lt.s32.totalorder %s185_s29, %s185_s29 }
  0x12   : > { %p1105_p9 = pneg %p1444_p8  ;;  %p1228_p12 = scmp.ne.s32.totalorder %s185_s29, %s1227_s6 }
  0x13   : > { %p1236_p5 = scmp.lt.s32.totalorder %s1227_s6, %s1227_s6 }
  0x14   : > { %p1452_p10 = pnand %p1105_p9, %p1424_p1 }
  0x15   : > { %p1237_p7 = por %p1236_p5, %p1235_p3 }
  0x16   : > { %p1218_p11 = pneg %p1452_p10 }
  0x18   : > { %p1230_p13 = pnand %p1228_p12, %p1218_p11 }
  0x1a   : > { %p1231_p0 = pneg %p1230_p13 }
  0x1c   : > { %p1238_p6 = pnand %p1237_p7, %p1231_p0 }
  0x1e   : > { %1241 = shalt.err (!%p1238_p6)
}
  0x1f   : > { %s1357_s7 = smov 64   ;;  %s1358_s8 = smov 4  }
  0x20   : > { %s1654_s1 = sld [smem:[#allocation11_spill]]  ;;  %p31_p9 = scmp.ge.s32.totalorder %s30_s5, 8 }
  0x21   : > { %s40_s11 = sadd.s32 1, %s1342_s17  ;;  %p47_p6 = scmp.ne.s32.totalorder %s1342_s17, %s1338_s16 }
  0x22   : > { %p48_p11 = scmp.eq.s32.totalorder %s1354_s20, 0  ;;  %s1666_s5 = smov (%p31_p9, %s30_s5), 0 }
  0x23   : > { %p1476_p13 = por %p1428_p2, %p47_p6  ;;  %s37_s14 = ssub.s32 %s1350_s19, %s1666_s5 }
  0x24   : > { %p1470_p12 = por %p48_p11, %p47_p6  ;;  %p1118_p0 = scmp.lt.s32.totalorder %s1354_s20, 8 }
  0x25   : > { %s1656_s13 = scalar_select %p1476_p13, 1, 0 }
  0x26   : > { %1108 = dma.hbm_to_vmem [thread:$0]  (!%p1452_p10), %s1654_s1, 2048, %s185_s29, [#allocation6], %s1357_s7, %s1357_s7, %s1358_s8  }
  0x27   : > { %p38_p10 = scmp.eq.s32.totalorder %s37_s14, 0  ;;  %s210_s21 = sand.u32 1, %s1342_s17  }
  0x28   : > { %s888_s22 = sshll.u32 %s210_s21, 7  ;;  %s952_s29 = sshll.u32 %s1350_s19, 11 }
  0x29   : > { %s1485_s28 = scalar_select %p38_p10, %s1342_s17, %s40_s11  }
  0x2a   : > { %s221_s7 = scalar_lea.hbm %s1641_s0, %s952_s29  ;;  %s214_s8 = scalar_lea.vmem [#allocation2], %s888_s22 }
  0x2b   : > { %s222_s9 = sshll.u32 %s214_s8, 4  ;;  %p1493_p2 = pnand %p1118_p0, %p1470_p12  ;;  %s223_s9 = int_to_ptr.vmem [resolvable:$true] %s222_s9 }
  0x2c   : > { %s211_s10 = scalar_lea.sflag [#allocation3], %s210_s21  ;;  %s1255_s14 = scalar_lea.vmem %s223_s9, 2048 }
  0x2d   : > { %p1244_p3 = pneg %p1493_p2  ;;  %p1256_p5 = scmp.ne.s32.totalorder %s223_s9, %s1255_s14 }
  0x2e   : > { %s1359_s11 = smov [#allocation2]  }
  0x2f   : > { %p1258_p7 = pnand %p1256_p5, %p1244_p3  ;;  %s1260_s1 = sshll.u32 %s1359_s11, 4  ;;  %s1261_s1 = int_to_ptr.vmem [resolvable:$false] %s1260_s1 }
  0x30   : > { %s1262_s29 = scalar_lea.vmem %s1261_s1, 4096  ;;  %p1263_p6 = scmp.lt.s32.totalorder %s223_s9, %s1261_s1 }
  0x31   : > { %p1259_p9 = pneg %p1258_p7  ;;  %p1264_p11 = scmp.lt.s32.totalorder %s1262_s29, %s1255_s14 }
  0x33   : > { %p1265_p10 = por %p1264_p11, %p1263_p6 }
  0x35   : > { %p1266_p13 = pnand %p1265_p10, %p1259_p9 }
  0x37   : > { %1269 = shalt.err (!%p1266_p13)
}
  0x38   : > { %s1360_s12 = smov 128   ;;  %s1361_s22 = smov 8  }
  0x39   : > { %1112 = dma.hbm_to_vmem [thread:$0]  (!%p1493_p2), %s221_s7, 2048, %s223_s9, %s211_s10, %s1360_s12, %s1360_s12, %s1361_s22  }
  0x3a   : > { %234 = sbr.rel (%p1444_p8) target bundleno = 346 (0x15a), region = 36  ;;  %s1504_s21 = sand.u32 (!%p1444_p8), 1, %s1338_s16  }
  0x3b   : > { %s893_s30 = sshll.u32 (!%p1444_p8), %s1504_s21, 7  ;;  %s237_s1 = scalar_lea.sflag (!%p1444_p8), [#allocation3], %s1504_s21 }
  0x3c   : > { %s1508_s6 = scalar_lea.vmem (!%p1444_p8), [#allocation2], %s893_s30 }
  0x3f   : > { %1321 = dma.done.wait (%p1434_p4), %s237_s1, 2048  }
  0x40   : > { %1323 = vsyncadd (%p1434_p4), %s237_s1, 4294965248 }
  0x41   : > { %1325 = dma.done.wait (%p1424_p1), [#allocation6], 2048  }
  0x42   : > { %1327 = vsyncadd (%p1424_p1), [#allocation6], 4294965248  ;;  %v1176_v0 = vld [vmem:[#allocation5 + $0x78] sm:$0xff]   ;;  %v1178_v2 = vld [vmem:[#allocation5 + $0x70] sm:$0xff]   ;;  %s895_s8 = sshll.u32 %s1504_s21, 6  ;;  %s969_s24 = sshll.u32 %s1346_s18, 10 }
  0x43   : > { %v1177_v1 = vld [vmem:[#allocation5 + $0x38] sm:$0xff]   ;;  %1017 = vmatprep.subr.bf16.mxu0 %v1176_v0  ;;  %1081 = vmatprep.subr.bf16.mxu1 %v1176_v0  ;;  %v1179_v3 = vld [vmem:[#allocation5 + $0x30] sm:$0xff]   ;;  %v1180_v4 = vld [vmem:[#allocation5 + $0x68] sm:$0xff]   ;;  %s1555_s9 = scalar_lea.vmem [#allocation7], %s895_s8  ;;  %s1590_s29 = scalar_lea.hbm %s1645_s4, %s969_s24 }
  0x44   : > { %1018 = vmatpush3.bf16.msra.mxu0 %v1177_v1  ;;  %1089 = vmatpush3.bf16.msra.mxu1 %v1177_v1  ;;  %v1181_v5 = vld [vmem:[#allocation5 + $0x28] sm:$0xff]   ;;  %v1182_v6 = vld [vmem:[#allocation5 + $0x60] sm:$0xff]   ;;  %v1184_v8 = vld [vmem:[#allocation5 + $0x58] sm:$0xff]   ;;  %s762_s10 = sshll.u32 %s1555_s9, 4  ;;  %s748_s18 = scalar_lea.sflag [#allocation4], %s1504_s21  ;;  %s1592_s10 = int_to_ptr.vmem [resolvable:$true] %s762_s10 }
  0x45   : > { %1019 = vmatprep.subr.bf16.mxu0 %v1178_v2  ;;  %1082 = vmatprep.subr.bf16.mxu1 %v1178_v2  ;;  %v1183_v7 = vld [vmem:[#allocation5 + $0x20] sm:$0xff]   ;;  %v1185_v9 = vld [vmem:[#allocation5 + $0x18] sm:$0xff]   ;;  %v1186_v10 = vld [vmem:[#allocation5 + $0x50] sm:$0xff]   ;;  %s1270_s12 = scalar_lea.vmem %s1592_s10, 1024  ;;  %p1658_p4 = scmp.ne.s32.totalorder %s1656_s13, 0 }
  0x46   : > { %v1194_v11 = vld [vmem:[%s1508_s6 + $0x4] ss:$8 sps:$4 sm:$0xff]   ;;  %v1187_v13 = vld [vmem:[#allocation5 + $0x10] sm:$0xff]   ;;  %v1192_v18 = vld [vmem:[%s1508_s6] ss:$8 sps:$4 sm:$0xff]   ;;  %p1271_p1 = scmp.ne.s32.totalorder %s1592_s10, %s1270_s12  ;;  %s1362_s22 = smov [#allocation7]  }
  0x47   : > { %v1197_v12 = vld [vmem:[%s1508_s6 + $0x44] ss:$8 sps:$4 sm:$0xff]   ;;  %540 = vmatprep.mubr.bf16.mxu0 %v1194_v11  ;;  %v1195_v19 = vld [vmem:[%s1508_s6 + $0x40] ss:$8 sps:$4 sm:$0xff]   ;;  %v1198_v20 = vld [vmem:[%s1508_s6 + $0x14] ss:$8 sps:$4 sm:$0xff]  }
  0x48   : > { %1020 = vmatpush3.bf16.msra.mxu0 %v1179_v3  ;;  %1090 = vmatpush3.bf16.msra.mxu1 %v1179_v3  ;;  %v1188_v14 = vld [vmem:[#allocation5 + $0x48] sm:$0xff]   ;;  %v1190_v16 = vld [vmem:[#allocation5 + $0x40] sm:$0xff]   ;;  %v1200_v21 = vld [vmem:[%s1508_s6 + $0x54] ss:$8 sps:$4 sm:$0xff]   ;;  %p1272_p8 = pnand %p1271_p1, %p1658_p4  ;;  %s1274_s30 = sshll.u32 %s1362_s22, 4  ;;  %s1275_s30 = int_to_ptr.vmem [resolvable:$false] %s1274_s30 }
  0x49   : > { %1021 = vmatprep.subr.bf16.mxu0 %v1180_v4  ;;  %1083 = vmatprep.subr.bf16.mxu1 %v1180_v4  ;;  %v1189_v15 = vld [vmem:[#allocation5 + $0x8] sm:$0xff]   ;;  %v1191_v17 = vld [vmem:[#allocation5] sm:$0xff]   ;;  %v1202_v22 = vld [vmem:[%s1508_s6 + $0x10] ss:$8 sps:$4 sm:$0xff]   ;;  %s1276_s1 = scalar_lea.vmem %s1275_s30, 2048  ;;  %p1277_p13 = scmp.lt.s32.totalorder %s1592_s10, %s1275_s30 }
  0x4a   : > { %572 = vmatprep.mubr.bf16.mxu1 %v1197_v12  ;;  %v1203_v23 = vld [vmem:[%s1508_s6 + $0x50] ss:$8 sps:$4 sm:$0xff]   ;;  %v1204_v24 = vld [vmem:[%s1508_s6 + $0x24] ss:$8 sps:$4 sm:$0xff]   ;;  %v1208_v26 = vld [vmem:[%s1508_s6 + $0x20] ss:$8 sps:$4 sm:$0xff]   ;;  %p1273_p12 = pneg %p1272_p8  ;;  %p1278_p0 = scmp.lt.s32.totalorder %s1276_s1, %s1270_s12 }
  0x4b   : > { %v1206_v25 = vld [vmem:[%s1508_s6 + $0x64] ss:$8 sps:$4 sm:$0xff]   ;;  %v1209_v27 = vld [vmem:[%s1508_s6 + $0x60] ss:$8 sps:$4 sm:$0xff]   ;;  %v1210_v28 = vld [vmem:[%s1508_s6 + $0x34] ss:$8 sps:$4 sm:$0xff]  }
  0x4c   : > { %1022 = vmatpush3.bf16.msra.mxu0 %v1181_v5  ;;  %1091 = vmatpush3.bf16.msra.mxu1 %v1181_v5  ;;  %v1212_v29 = vld [vmem:[%s1508_s6 + $0x74] ss:$8 sps:$4 sm:$0xff]   ;;  %v1214_v30 = vld [vmem:[%s1508_s6 + $0x30] ss:$8 sps:$4 sm:$0xff]   ;;  %v1537_v35 = vld [vmem:[%s1643_s2] ss:$0 sm:$0xff]  ;;  %p1279_p2 = por %p1278_p0, %p1277_p13 }
  0x4d   : > { %1023 = vmatprep.subr.bf16.mxu0 %v1182_v6  ;;  %1084 = vmatprep.subr.bf16.mxu1 %v1182_v6  ;;  %v1215_v31 = vld [vmem:[%s1508_s6 + $0x70] ss:$8 sps:$4 sm:$0xff]   ;;  %v1544_v43 = vld [vmem:[%s1644_s3] ss:$0 sm:$0xff] }
  0x4e   : > { %p1280_p3 = pnand %p1279_p2, %p1273_p12 }
  0x50   : > { %1024 = vmatpush3.bf16.msra.mxu0 %v1183_v7  ;;  %1092 = vmatpush3.bf16.msra.mxu1 %v1183_v7 }
  0x51   : > { %1025 = vmatprep.subr.bf16.mxu0 %v1184_v8  ;;  %1085 = vmatprep.subr.bf16.mxu1 %v1184_v8 }
  0x54   : > { %1026 = vmatpush3.bf16.msra.mxu0 %v1185_v9  ;;  %1093 = vmatpush3.bf16.msra.mxu1 %v1185_v9 }
  0x55   : > { %1027 = vmatprep.subr.bf16.mxu0 %v1186_v10  ;;  %1086 = vmatprep.subr.bf16.mxu1 %v1186_v10 }
  0x58   : > { %1028 = vmatpush3.bf16.msra.mxu0 %v1187_v13  ;;  %1094 = vmatpush3.bf16.msra.mxu1 %v1187_v13 }
  0x59   : > { %1029 = vmatprep.subr.bf16.mxu0 %v1188_v14  ;;  %1087 = vmatprep.subr.bf16.mxu1 %v1188_v14 }
  0x5c   : > { %1030 = vmatpush3.bf16.msra.mxu0 %v1189_v15  ;;  %1095 = vmatpush3.bf16.msra.mxu1 %v1189_v15 }
  0x5d   : > { %1031 = vmatprep.subr.bf16.mxu0 %v1190_v16  ;;  %1088 = vmatprep.subr.bf16.mxu1 %v1190_v16 }
  0x60   : > { %1032 = vmatpush3.bf16.msra.mxu0 %v1191_v17  ;;  %1096 = vmatpush3.bf16.msra.mxu1 %v1191_v17 }
  0x63   : > { %541 = vmatmul.mubr.bf16.vlgmr.msra.gmra.mxu0 %v1192_v18  ;;  %573 = vmatmul.mubr.bf16.vlgmr.msra.gmra.mxu1 %v1195_v19 }
  0x64   : > { %548 = vmatprep.mubr.bf16.mxu0 %v1198_v20  ;;  %580 = vmatprep.mubr.bf16.mxu1 %v1200_v21 }
  0x6b   : > { %549 = vmatmul.mubr.bf16.gmra.mxu0 %v1202_v22  ;;  %581 = vmatmul.mubr.bf16.gmra.mxu1 %v1203_v23 }
  0x6c   : > { %556 = vmatprep.mubr.bf16.mxu0 %v1204_v24  ;;  %588 = vmatprep.mubr.bf16.mxu1 %v1206_v25 }
  0x73   : > { %557 = vmatmul.mubr.bf16.gmra.mxu0 %v1208_v26  ;;  %589 = vmatmul.mubr.bf16.gmra.mxu1 %v1209_v27 }
  0x74   : > { %564 = vmatprep.mubr.bf16.mxu0 %v1210_v28  ;;  %596 = vmatprep.mubr.bf16.mxu1 %v1212_v29 }
  0x7b   : > { %565 = vmatmul.mubr.bf16.gmra.mxu0 %v1214_v30  ;;  %597 = vmatmul.mubr.bf16.gmra.mxu1 %v1215_v31 }
 0x123   : > { %v1033_v32 = vpop.f32.mrf.mxu0  ;;  %v1057_v33 = vpop.f32.mrf.mxu1 }
 0x125   : > { %v1034_v34 = vpop.f32.mrf.mxu0  ;;  %v1058_v36 = vpop.f32.mrf.mxu1 }
 0x126   : > { %v1035_v37 = vadd.f32 %v1034_v34, %v1033_v32  ;;  %v1059_v38 = vadd.f32 %v1058_v36, %v1057_v33 }
 0x127   : > { %v1036_v39 = vpop.f32.mrf.mxu0  ;;  %v1060_v40 = vpop.f32.mrf.mxu1 }
 0x128   : > { %v612_v41 = vmul.f32 %v1035_v37, %v1537_v35  ;;  %v620_v42 = vmul.f32 %v1059_v38, %v1537_v35 }
 0x129   : > { %v1037_v44 = vpop.f32.mrf.mxu0  ;;  %v1061_v45 = vpop.f32.mrf.mxu1 }
 0x12a   : > { %v1038_v46 = vadd.f32 %v1037_v44, %v1036_v39  ;;  %v1062_v47 = vadd.f32 %v1061_v45, %v1060_v40  ;;  %v635_v50 = vadd.f32 %v1544_v43, %v612_v41  ;;  %v643_v51 = vadd.f32 %v1544_v43, %v620_v42 }
 0x12b   : > { %v1039_v48 = vpop.f32.mrf.mxu0  ;;  %v1063_v49 = vpop.f32.mrf.mxu1 }
 0x12c   : > { %v613_v52 = vmul.f32 %v1038_v46, %v1537_v35  ;;  %v621_v53 = vmul.f32 %v1062_v47, %v1537_v35  ;;  %v651_v62 = vmax.f32 %v635_v50, 0.0  ;;  %v659_v63 = vmax.f32 %v643_v51, 0.0 }
 0x12d   : > { %v1040_v54 = vpop.f32.mrf.mxu0  ;;  %v1064_v55 = vpop.f32.mrf.mxu1 }
 0x12e   : > { %v636_v56 = vadd.f32 %v1544_v43, %v613_v52  ;;  %v644_v57 = vadd.f32 %v1544_v43, %v621_v53  ;;  %v1041_v58 = vadd.f32 %v1040_v54, %v1039_v48  ;;  %v1065_v59 = vadd.f32 %v1064_v55, %v1063_v49 }
 0x12f   : > { %v1042_v60 = vpop.f32.mrf.mxu0  ;;  %v1066_v61 = vpop.f32.mrf.mxu1 }
 0x130   : > { %v652_v0 = vmax.f32 %v636_v56, 0.0  ;;  %v660_v1 = vmax.f32 %v644_v57, 0.0  ;;  %v614_v2 = vmul.f32 %v1041_v58, %v1537_v35  ;;  %v622_v3 = vmul.f32 %v1065_v59, %v1537_v35 }
 0x131   : > { %v1043_v4 = vpop.f32.mrf.mxu0  ;;  %v1067_v5 = vpop.f32.mrf.mxu1 }
 0x132   : > { %v973_v6 = vpack.c.bf16 %v652_v0, %v651_v62  ;;  %v993_v7 = vpack.c.bf16 %v660_v1, %v659_v63  ;;  %v1044_v8 = vadd.f32 %v1043_v4, %v1042_v60  ;;  %v1068_v9 = vadd.f32 %v1067_v5, %v1066_v61 }
 0x133   : > { %v1045_v10 = vpop.f32.mrf.mxu0  ;;  %v1069_v11 = vpop.f32.mrf.mxu1  ;;  %v637_v12 = vadd.f32 %v1544_v43, %v614_v2  ;;  %v645_v13 = vadd.f32 %v1544_v43, %v622_v3 }
 0x134   : > { %974 = vst [vmem:[%s1555_s9] sm:$0xff] %v973_v6   ;;  %1013 = vst [vmem:[%s1555_s9 + $0x20] sm:$0xff] %v993_v7   ;;  %v615_v14 = vmul.f32 %v1044_v8, %v1537_v35  ;;  %v623_v15 = vmul.f32 %v1068_v9, %v1537_v35 }
 0x135   : > { %v1046_v16 = vpop.f32.mrf.mxu0  ;;  %v1070_v17 = vpop.f32.mrf.mxu1  ;;  %v653_v26 = vmax.f32 %v637_v12, 0.0  ;;  %v661_v27 = vmax.f32 %v645_v13, 0.0 }
 0x136   : > { %v1047_v18 = vadd.f32 %v1046_v16, %v1045_v10  ;;  %v1071_v19 = vadd.f32 %v1070_v17, %v1069_v11  ;;  %v638_v20 = vadd.f32 %v1544_v43, %v615_v14  ;;  %v646_v21 = vadd.f32 %v1544_v43, %v623_v15 }
 0x137   : > { %v1048_v22 = vpop.f32.mrf.mxu0  ;;  %v1072_v23 = vpop.f32.mrf.mxu1 }
 0x138   : > { %v616_v24 = vmul.f32 %v1047_v18, %v1537_v35  ;;  %v624_v25 = vmul.f32 %v1071_v19, %v1537_v35  ;;  %v654_v28 = vmax.f32 %v638_v20, 0.0  ;;  %v662_v29 = vmax.f32 %v646_v21, 0.0 }
 0x139   : > { %v1049_v30 = vpop.f32.mrf.mxu0  ;;  %v1073_v31 = vpop.f32.mrf.mxu1 }
 0x13a   : > { %v1050_v32 = vadd.f32 %v1049_v30, %v1048_v22  ;;  %v1074_v33 = vadd.f32 %v1073_v31, %v1072_v23  ;;  %v978_v34 = vpack.c.bf16 %v654_v28, %v653_v26  ;;  %v998_v36 = vpack.c.bf16 %v662_v29, %v661_v27 }
 0x13b   : > { %v1051_v37 = vpop.f32.mrf.mxu0  ;;  %v1075_v38 = vpop.f32.mrf.mxu1  ;;  %v639_v39 = vadd.f32 %v1544_v43, %v616_v24  ;;  %v647_v40 = vadd.f32 %v1544_v43, %v624_v25 }
 0x13c   : > { %v617_v41 = vmul.f32 %v1050_v32, %v1537_v35  ;;  %v625_v42 = vmul.f32 %v1074_v33, %v1537_v35  ;;  %1010 = vst [vmem:[%s1555_s9 + $0x8] sm:$0xff] %v978_v34   ;;  %1014 = vst [vmem:[%s1555_s9 + $0x28] sm:$0xff] %v998_v36  }
 0x13d   : > { %v1052_v44 = vpop.f32.mrf.mxu0  ;;  %v1076_v45 = vpop.f32.mrf.mxu1  ;;  %v655_v52 = vmax.f32 %v639_v39, 0.0  ;;  %v663_v53 = vmax.f32 %v647_v40, 0.0 }
 0x13e   : > { %v640_v46 = vadd.f32 %v1544_v43, %v617_v41  ;;  %v648_v47 = vadd.f32 %v1544_v43, %v625_v42  ;;  %v1053_v48 = vadd.f32 %v1052_v44, %v1051_v37  ;;  %v1077_v49 = vadd.f32 %v1076_v45, %v1075_v38 }
 0x13f   : > { %v1054_v50 = vpop.f32.mrf.mxu0  ;;  %v1078_v51 = vpop.f32.mrf.mxu1 }
 0x140   : > { %v656_v54 = vmax.f32 %v640_v46, 0.0  ;;  %v664_v55 = vmax.f32 %v648_v47, 0.0  ;;  %v618_v56 = vmul.f32 %v1053_v48, %v1537_v35  ;;  %v626_v57 = vmul.f32 %v1077_v49, %v1537_v35 }
 0x141   : > { %v1055_v58 = vpop.f32.mrf.mxu0  ;;  %v1079_v59 = vpop.f32.mrf.mxu1 }
 0x142   : > { %v983_v60 = vpack.c.bf16 %v656_v54, %v655_v52  ;;  %v1003_v61 = vpack.c.bf16 %v664_v55, %v663_v53  ;;  %v1056_v62 = vadd.f32 %v1055_v58, %v1054_v50  ;;  %v1080_v63 = vadd.f32 %v1079_v59, %v1078_v51 }
 0x143   : > { %v641_v0 = vadd.f32 %v1544_v43, %v618_v56  ;;  %v649_v1 = vadd.f32 %v1544_v43, %v626_v57 }
 0x144   : > { %1011 = vst [vmem:[%s1555_s9 + $0x10] sm:$0xff] %v983_v60   ;;  %1015 = vst [vmem:[%s1555_s9 + $0x30] sm:$0xff] %v1003_v61   ;;  %v619_v2 = vmul.f32 %v1056_v62, %v1537_v35  ;;  %v627_v3 = vmul.f32 %v1080_v63, %v1537_v35 }
 0x145   : > { %v657_v6 = vmax.f32 %v641_v0, 0.0  ;;  %v665_v7 = vmax.f32 %v649_v1, 0.0 }
 0x146   : > { %v642_v4 = vadd.f32 %v1544_v43, %v619_v2  ;;  %v650_v5 = vadd.f32 %v1544_v43, %v627_v3 }
 0x148   : > { %v658_v8 = vmax.f32 %v642_v4, 0.0  ;;  %v666_v9 = vmax.f32 %v650_v5, 0.0 }
 0x14a   : > { %v988_v35 = vpack.c.bf16 %v658_v8, %v657_v6  ;;  %v1008_v10 = vpack.c.bf16 %v666_v9, %v665_v7 }
 0x14c   : > { %1012 = vst [vmem:[%s1555_s9 + $0x18] sm:$0xff] %v988_v35   ;;  %1016 = vst [vmem:[%s1555_s9 + $0x38] sm:$0xff] %v1008_v10  }
 0x14d   : > { %1283 = shalt.err (!%p1280_p3)
}
 0x14e   : > { %s1284_s6 = scalar_lea.hbm %s1590_s29, 1024  ;;  %s1288_s27 = scalar_lea.hbm %s1645_s4, 8192 }
 0x14f   : > { %p1285_p5 = scmp.ne.s32.totalorder %s1590_s29, %s1284_s6  ;;  %p1289_p6 = scmp.lt.s32.totalorder %s1590_s29, %s1645_s4 }
 0x150   : > { %p1290_p11 = scmp.lt.s32.totalorder %s1288_s27, %s1284_s6 }
 0x151   : > { %p1286_p7 = pnand %p1285_p5, %p1658_p4 }
 0x152   : > { %p1291_p10 = por %p1290_p11, %p1289_p6 }
 0x153   : > { %p1287_p9 = pneg %p1286_p7 }
 0x155   : > { %p1292_p1 = pnand %p1291_p10, %p1287_p9 }
 0x157   : > { %1295 = shalt.err (!%p1292_p1)
}
 0x158   : > { %s1363_s9 = smov 64   ;;  %s1364_s24 = smov 4  }
 0x159   : > { %1103 = dma.vmem_to_hbm [thread:$0]  (%p1658_p4), %s1592_s10, 1024, %s1590_s29, %s748_s18, %s1363_s9, %s1363_s9, %s1364_s24  }
 0x15a PF: > { %p1120_p8 = scmp.ge.s32.totalorder %s1354_s20, 2  ;;  %s777_s14 = sand.u32 1, %s1334_s15  }
 0x15b   : > { %p1659_p12 = scmp.ne.s32.totalorder %s1651_s26, 0  ;;  %s778_s11 = scalar_lea.sflag [#allocation4], %s777_s14 }
 0x15d   : > { %p1114_p13 = pnand %p1120_p8, %p1659_p12 }
 0x15f   : > { %p1115_p0 = pneg %p1114_p13 }
 0x161   : > { %1329 = dma.done.wait (%p1115_p0), %s778_s11, 1024  }
 0x162   : > { %1331 = vsyncadd (%p1115_p0), %s778_s11, 4294966272  ;;  %s21_s20 = sadd.s32 1, %s1354_s20   ;;  %s1660_s15 = smov %s1338_s16 }
 0x163   : > { %p18_p2 = scmp.ge.s32.totalorder %s21_s20, 10   ;;  %s1661_s16 = smov %s1342_s17 }
 0x164   : > { %s1662_s17 = smov %s1485_s28  ;;  %s1663_s18 = smov %s1350_s19 }
 0x165   : > { %s1664_s19 = smov %s1666_s5  ;;  %20 = sbr.rel (!%p18_p2) target bundleno = 9 (0x9), region = 92 }
 0x16a   :  { %783 = vsyncpa [#allocation3], 1 }
 0x16b   :  { %785 = vsyncpa [#allocation3 + $0x1], 1 }
 0x16c   :  { %786 = vsyncpa [#allocation6], 1 }
 0x16d   :  { %787 = vsyncpa [#allocation4], 1 }
 0x16e   :  { %789 = vsyncpa [#allocation4 + $0x1], 1 }

</bundles_post_ra>
